<compile_context>
chip_gen: v7x
topology: tpu7x:2x2x1
jax: 0.10.0
libtpu: 0.0.40
codegen_flags: <defaults>
</compile_context>

<pallas_src>
import functools
import math

import jax
import jax.numpy as jnp
import numpy as np
from jax import lax
from jax.experimental import pallas as pl
from jax.experimental.pallas import tpu as pltpu

H_MAX = 0.05        # same as ode_solve in MIOFlow/ode.py
_MAX_UNROLL = 256   # fully unroll the Euler loop up to this many steps/interval


# ----------------------------- Pallas kernel --------------------------------
def _neural_ode_kernel(schedule, max_unroll,
                       # VMEM inputs
                       t_ref, z0_ref, w1z_ref, w1t_ref, b1_ref, w2_ref, b2_ref,
                       # full (time_len, bs, D) output block
                       out_ref):
    """Integrates every time interval in one kernel invocation.

    `schedule` is a static tuple of (t0, h, n_steps, table_offset) per interval.
    """
    w1z = w1z_ref[...]          # (D, H)
    w1t = w1t_ref[...]          # (1, H)
    b1 = b1_ref[...]            # (1, H)
    w2 = w2_ref[...]            # (H, D)
    b2 = b2_ref[...]            # (1, D)

    # Hoisted per-step bias for every statically-unrolled Euler step of every
    # interval: one vectorized mul/add instead of per-step scalar filler.
    bias_tab = b1 + t_ref[...] * w1t        # (T_pad, H)

    z = z0_ref[...].astype(jnp.float32)
    out_ref[0] = z                          # z[0] = z0 (ODEAdjoint.forward)

    for idx, (t0, h, n, ofs) in enumerate(schedule):
        hf = jnp.float32(h)
        # Fold h into the second layer once per interval (off the per-step
        # serial path):  z + h*(act@W2 + b2)  ==  z + act@(h*W2) + h*b2.
        w2h = hf * w2
        b2h = hf * b2

        def step(zz, bias_k):
            pre = jnp.dot(zz, w1z, preferred_element_type=jnp.float32) + bias_k
            return zz + jnp.dot(jnp.tanh(pre), w2h,
                                preferred_element_type=jnp.float32) + b2h

        if n <= max_unroll:
            # Exact-length, fully-unrolled straight-line code (no masked steps).
            for k in range(n):
                z = step(z, bias_tab[ofs + k:ofs + k + 1, :])
        else:
            # Very long horizons only: dynamic loop, partially unrolled so the
            # scheduler can still overlap bias work with the matmul chain.
            # (t_k here is t0 + k*h in f32 -- slight divergence from the
            #  float64-accumulated reference, acceptable for huge horizons.)
            t0f = jnp.float32(t0)

            def body(k, zz):
                bias_k = b1 + (t0f + k.astype(jnp.float32) * hf) * w1t
                return step(zz, bias_k)

            z = lax.fori_loop(0, n, body, z, unroll=8)

        out_ref[idx + 1] = z


@functools.partial(jax.jit,
                   static_argnames=("schedule", "time_len", "max_unroll"))
def _integrate(z0, t_table, params, *, schedule, time_len, max_unroll):
    """Single pallas_call integrating all intervals; returns (time_len, bs, D)."""
    w1z, w1t, b1, w2, b2 = params
    bs, D = z0.shape
    H = w1z.shape[1]
    T_pad = t_table.shape[0]

    kernel = functools.partial(_neural_ode_kernel, schedule, max_unroll)

    total_steps = sum(n for (_, _, n, _) in schedule)
    flops = 4 * bs * D * H * max(total_steps, 1)
    bytes_accessed = 4 * int(z0.size + w1z.size + w1t.size + b1.size + w2.size
                             + b2.size + t_table.size + time_len * bs * D)
    cost = pl.CostEstimate(flops=flops,
                           transcendentals=bs * H * max(total_steps, 1),
                           bytes_accessed=bytes_accessed)

    return pl.pallas_call(
        kernel,
        out_shape=jax.ShapeDtypeStruct((time_len, bs, D), jnp.float32),
        grid=(1,),
        in_specs=[
            pl.BlockSpec((T_pad, 1), lambda i: (0, 0)),   # step times
            pl.BlockSpec((bs, D), lambda i: (0, 0)),      # z0
            pl.BlockSpec((D, H), lambda i: (0, 0)),       # W1 (z part)
            pl.BlockSpec((1, H), lambda i: (0, 0)),       # W1 (t part)
            pl.BlockSpec((1, H), lambda i: (0, 0)),       # b1
            pl.BlockSpec((H, D), lambda i: (0, 0)),       # W2
            pl.BlockSpec((1, D), lambda i: (0, 0)),       # b2
        ],
        out_specs=pl.BlockSpec((time_len, bs, D), lambda i: (0, 0, 0)),
        # The time axis is inherently sequential; the only safely parallel axis
        # would be batch (worth a core_parallel split on v7x once bs is large).
        compiler_params=pltpu.CompilerParams(
            dimension_semantics=("arbitrary",)),
        cost_estimate=cost,
    )(t_table, z0, w1z, w1t, b1, w2, b2)


# ----------------------------- NeuralODE wrapper -----------------------------
class NeuralODEPallas:
    """Mirrors NeuralODE.forward (ODEAdjoint.forward path, no_grad)."""

    def __init__(self, params):
        self.params = tuple(jnp.asarray(p, jnp.float32) for p in params)

    def __call__(self, z0, t=(0.0, 1.0), return_whole_sequence=False):
        t = [float(ti) for ti in t]
        z0 = jnp.asarray(z0, jnp.float32)
        time_len = len(t)
        if time_len < 2:
            return z0[None] if return_whole_sequence else z0

        # Static per-interval schedule (like ode_solve, done in Python).
        schedule = []
        all_times = []
        ofs = 0
        for i in range(time_len - 1):
            t0, t1 = t[i], t[i + 1]
            n = int(math.ceil(abs(t1 - t0) / H_MAX))
            h = (t1 - t0) / n if n > 0 else 0.0
            this_ofs = -1
            if n <= _MAX_UNROLL:
                # Exact step times, accumulated in float64 just like the
                # reference (tc = tc + h), then cast once to f32.
                tc = t0
                this_ofs = ofs
                for _ in range(n):
                    all_times.append(tc)
                    tc = tc + h
                ofs += n
            schedule.append((float(t0), float(h), int(n), int(this_ofs)))

        t_total = len(all_times)
        T_pad = max(8, ((t_total + 7) // 8) * 8)
        t_table = np.zeros((T_pad, 1), np.float32)
        if t_total:
            t_table[:t_total, 0] = np.asarray(all_times, np.float64).astype(
                np.float32)

        z_all = _integrate(z0, jnp.asarray(t_table), self.params,
                           schedule=tuple(schedule), time_len=time_len,
                           max_unroll=_MAX_UNROLL)     # (time_len, bs, D)
        return z_all if return_whole_sequence else z_all[-1]


# ----------------------------- numpy reference -------------------------------
def _mlp_f_np(z, t, params):
    w1z, w1t, b1, w2, b2 = params
    return np.tanh(z @ w1z + t * w1t + b1) @ w2 + b2


def _reference_forward(z0, t, params, return_whole_sequence=False):
    params = [np.asarray(p, np.float32) for p in params]
    z = np.asarray(z0, np.float32)
    zs = [z]
    for i_t in range(len(t) - 1):
        t0, t1 = float(t[i_t]), float(t[i_t + 1])
        n = math.ceil(abs(t1 - t0) / H_MAX)
        h = (t1 - t0) / n
        tc = t0
        for _ in range(n):
            z = (z + np.float32(h) * _mlp_f_np(z, np.float32(tc), params)
                 ).astype(np.float32)
            tc = tc + h
        zs.append(z)
    return np.stack(zs, axis=0) if return_whole_sequence else zs[-1]


# ------------------------------------ main -----------------------------------
if __name__ == "__main__":
    bs, D, Hh = 8, 16, 32   # batch, feature dim of z, hidden width of the ODEF

    key = jax.random.PRNGKey(0)
    k1, k2, k3, k4, k5, kz = jax.random.split(key, 6)
    params = (
        0.1 * jax.random.normal(k1, (D, Hh), jnp.float32),   # W1 (z part)
        0.1 * jax.random.normal(k2, (1, Hh), jnp.float32),    # W1 (t part)
        0.1 * jax.random.normal(k3, (1, Hh), jnp.float32),    # b1
        0.1 * jax.random.normal(k4, (Hh, D), jnp.float32),    # W2
        0.1 * jax.random.normal(k5, (1, D), jnp.float32),     # b2
    )
    z0 = jax.random.normal(kz, (bs, D), jnp.float32)

    model = NeuralODEPallas(params)
    params_np = [np.asarray(p) for p in params]
    z0_np = np.asarray(z0)

    # 1) Default t=(0.0, 1.0), final state (single interval, 20 Euler steps).
    out1 = jax.block_until_ready(model(z0))
    ref1 = _reference_forward(z0_np, (0.0, 1.0), params_np)
    np.testing.assert_allclose(np.asarray(out1), ref1, rtol=1e-5, atol=1e-5)

    # 2) Multi-interval, non-uniform spacing, whole sequence (exercises the
    #    per-interval exact-length unrolls and the in-kernel sequence output).
    t2 = (0.0, 0.3, 0.75, 1.5)
    out2 = jax.block_until_ready(model(z0, t=t2, return_whole_sequence=True))
    ref2 = _reference_forward(z0_np, t2, params_np, return_whole_sequence=True)
    np.testing.assert_allclose(np.asarray(out2), ref2, rtol=1e-5, atol=1e-5)

    print("KERNEL_OK")
</pallas_src>

<mosaic_0001>
module attributes {stable_mosaic.version = 11 : i64} {
  func.func @_neural_ode_kernel(%arg0: i32, %arg1: memref<24x1xf32, #tpu.memory_space<vmem>>, %arg2: memref<8x16xf32, #tpu.memory_space<vmem>>, %arg3: memref<16x32xf32, #tpu.memory_space<vmem>>, %arg4: memref<1x32xf32, #tpu.memory_space<vmem>>, %arg5: memref<1x32xf32, #tpu.memory_space<vmem>>, %arg6: memref<32x16xf32, #tpu.memory_space<vmem>>, %arg7: memref<1x16xf32, #tpu.memory_space<vmem>>, %arg8: memref<2x8x16xf32, #tpu.memory_space<vmem>>) attributes {dimension_semantics = [#tpu.dimension_semantics<arbitrary>], iteration_bounds = array<i64: 1>, scalar_prefetch = 0 : i64, scratch_operands = 0 : i64, tpu.core_type = #tpu.core_type<tc>, window_params = [{pipeline_mode = #tpu.pipeline_mode<synchronous>, transform_indices = @transform_0, window_bounds = array<i64: 24, 1>}, {pipeline_mode = #tpu.pipeline_mode<synchronous>, transform_indices = @transform_1, window_bounds = array<i64: 8, 16>}, {pipeline_mode = #tpu.pipeline_mode<synchronous>, transform_indices = @transform_2, window_bounds = array<i64: 16, 32>}, {pipeline_mode = #tpu.pipeline_mode<synchronous>, transform_indices = @transform_3, window_bounds = array<i64: 1, 32>}, {pipeline_mode = #tpu.pipeline_mode<synchronous>, transform_indices = @transform_4, window_bounds = array<i64: 1, 32>}, {pipeline_mode = #tpu.pipeline_mode<synchronous>, transform_indices = @transform_5, window_bounds = array<i64: 32, 16>}, {pipeline_mode = #tpu.pipeline_mode<synchronous>, transform_indices = @transform_6, window_bounds = array<i64: 1, 16>}, {pipeline_mode = #tpu.pipeline_mode<synchronous>, transform_indices = @transform_7, window_bounds = array<i64: 2, 8, 16>}]} {
    %c0 = arith.constant 0 : index
    %c0_0 = arith.constant 0 : index
    %0 = vector.load %arg3[%c0, %c0_0] : memref<16x32xf32, #tpu.memory_space<vmem>>, vector<16x32xf32>
    %c0_1 = arith.constant 0 : index
    %c0_2 = arith.constant 0 : index
    %1 = vector.load %arg4[%c0_1, %c0_2] : memref<1x32xf32, #tpu.memory_space<vmem>>, vector<1x32xf32>
    %c0_3 = arith.constant 0 : index
    %c0_4 = arith.constant 0 : index
    %2 = vector.load %arg5[%c0_3, %c0_4] : memref<1x32xf32, #tpu.memory_space<vmem>>, vector<1x32xf32>
    %c0_5 = arith.constant 0 : index
    %c0_6 = arith.constant 0 : index
    %3 = vector.load %arg6[%c0_5, %c0_6] : memref<32x16xf32, #tpu.memory_space<vmem>>, vector<32x16xf32>
    %c0_7 = arith.constant 0 : index
    %c0_8 = arith.constant 0 : index
    %4 = vector.load %arg7[%c0_7, %c0_8] : memref<1x16xf32, #tpu.memory_space<vmem>>, vector<1x16xf32>
    %c0_9 = arith.constant 0 : index
    %c0_10 = arith.constant 0 : index
    %5 = vector.load %arg1[%c0_9, %c0_10] : memref<24x1xf32, #tpu.memory_space<vmem>>, vector<24x1xf32>
    %6 = vector.broadcast %5 : vector<24x1xf32> to vector<24x32xf32>
    %7 = vector.broadcast %1 : vector<1x32xf32> to vector<24x32xf32>
    %8 = arith.mulf %6, %7 : vector<24x32xf32>
    %9 = vector.broadcast %2 : vector<1x32xf32> to vector<24x32xf32>
    %10 = arith.addf %9, %8 : vector<24x32xf32>
    %c0_11 = arith.constant 0 : index
    %c0_12 = arith.constant 0 : index
    %11 = vector.load %arg2[%c0_11, %c0_12] : memref<8x16xf32, #tpu.memory_space<vmem>>, vector<8x16xf32>
    %c0_13 = arith.constant 0 : index
    %c0_14 = arith.constant 0 : index
    %c0_15 = arith.constant 0 : index
    %12 = vector.load %arg8[%c0_13, %c0_14, %c0_15] : memref<2x8x16xf32, #tpu.memory_space<vmem>>, vector<1x8x16xf32>
    %13 = vector.shape_cast %12 : vector<1x8x16xf32> to vector<8x16xf32>
    %14 = vector.shape_cast %11 : vector<8x16xf32> to vector<1x8x16xf32>
    tpu.vector_store %arg8[%c0_13, %c0_14, %c0_15], %14 {strides = array<i32>} : memref<2x8x16xf32, #tpu.memory_space<vmem>>, vector<1x8x16xf32>,
    %cst = arith.constant 5.000000e-02 : f32
    %15 = vector.broadcast %cst : f32 to vector<32x16xf32>
    %16 = arith.mulf %15, %3 : vector<32x16xf32>
    %cst_16 = arith.constant 5.000000e-02 : f32
    %17 = vector.broadcast %cst_16 : f32 to vector<1x16xf32>
    %18 = arith.mulf %17, %4 : vector<1x16xf32>
    %19 = vector.extract_strided_slice %10 {offsets = [0, 0], sizes = [1, 32], strides = [1, 1]} : vector<24x32xf32> to vector<1x32xf32>
    %cst_17 = arith.constant dense<0.000000e+00> : vector<8x32xf32>
    %20 = tpu.matmul %11, %0, %cst_17 {dimension_numbers = #tpu.dot_dimension_numbers<[1], [0], [0], [1], [0, 0, 1, 1], [], []>} : vector<8x16xf32>, vector<16x32xf32>, vector<8x32xf32> -> vector<8x32xf32>
    %21 = vector.broadcast %19 : vector<1x32xf32> to vector<8x32xf32>
    %22 = arith.addf %20, %21 : vector<8x32xf32>
    %23 = math.tanh %22 : vector<8x32xf32>
    %cst_18 = arith.constant dense<0.000000e+00> : vector<8x16xf32>
    %24 = tpu.matmul %23, %16, %cst_18 {dimension_numbers = #tpu.dot_dimension_numbers<[1], [0], [0], [1], [0, 0, 1, 1], [], []>} : vector<8x32xf32>, vector<32x16xf32>, vector<8x16xf32> -> vector<8x16xf32>
    %25 = arith.addf %11, %24 : vector<8x16xf32>
    %26 = vector.broadcast %18 : vector<1x16xf32> to vector<8x16xf32>
    %27 = arith.addf %25, %26 : vector<8x16xf32>
    %28 = vector.extract_strided_slice %10 {offsets = [1, 0], sizes = [1, 32], strides = [1, 1]} : vector<24x32xf32> to vector<1x32xf32>
    %cst_19 = arith.constant dense<0.000000e+00> : vector<8x32xf32>
    %29 = tpu.matmul %27, %0, %cst_19 {dimension_numbers = #tpu.dot_dimension_numbers<[1], [0], [0], [1], [0, 0, 1, 1], [], []>} : vector<8x16xf32>, vector<16x32xf32>, vector<8x32xf32> -> vector<8x32xf32>
    %30 = vector.broadcast %28 : vector<1x32xf32> to vector<8x32xf32>
    %31 = arith.addf %29, %30 : vector<8x32xf32>
    %32 = math.tanh %31 : vector<8x32xf32>
    %cst_20 = arith.constant dense<0.000000e+00> : vector<8x16xf32>
    %33 = tpu.matmul %32, %16, %cst_20 {dimension_numbers = #tpu.dot_dimension_numbers<[1], [0], [0], [1], [0, 0, 1, 1], [], []>} : vector<8x32xf32>, vector<32x16xf32>, vector<8x16xf32> -> vector<8x16xf32>
    %34 = arith.addf %27, %33 : vector<8x16xf32>
    %35 = vector.broadcast %18 : vector<1x16xf32> to vector<8x16xf32>
    %36 = arith.addf %34, %35 : vector<8x16xf32>
    %37 = vector.extract_strided_slice %10 {offsets = [2, 0], sizes = [1, 32], strides = [1, 1]} : vector<24x32xf32> to vector<1x32xf32>
    %cst_21 = arith.constant dense<0.000000e+00> : vector<8x32xf32>
    %38 = tpu.matmul %36, %0, %cst_21 {dimension_numbers = #tpu.dot_dimension_numbers<[1], [0], [0], [1], [0, 0, 1, 1], [], []>} : vector<8x16xf32>, vector<16x32xf32>, vector<8x32xf32> -> vector<8x32xf32>
    %39 = vector.broadcast %37 : vector<1x32xf32> to vector<8x32xf32>
    %40 = arith.addf %38, %39 : vector<8x32xf32>
    %41 = math.tanh %40 : vector<8x32xf32>
    %cst_22 = arith.constant dense<0.000000e+00> : vector<8x16xf32>
    %42 = tpu.matmul %41, %16, %cst_22 {dimension_numbers = #tpu.dot_dimension_numbers<[1], [0], [0], [1], [0, 0, 1, 1], [], []>} : vector<8x32xf32>, vector<32x16xf32>, vector<8x16xf32> -> vector<8x16xf32>
    %43 = arith.addf %36, %42 : vector<8x16xf32>
    %44 = vector.broadcast %18 : vector<1x16xf32> to vector<8x16xf32>
    %45 = arith.addf %43, %44 : vector<8x16xf32>
    %46 = vector.extract_strided_slice %10 {offsets = [3, 0], sizes = [1, 32], strides = [1, 1]} : vector<24x32xf32> to vector<1x32xf32>
    %cst_23 = arith.constant dense<0.000000e+00> : vector<8x32xf32>
    %47 = tpu.matmul %45, %0, %cst_23 {dimension_numbers = #tpu.dot_dimension_numbers<[1], [0], [0], [1], [0, 0, 1, 1], [], []>} : vector<8x16xf32>, vector<16x32xf32>, vector<8x32xf32> -> vector<8x32xf32>
    %48 = vector.broadcast %46 : vector<1x32xf32> to vector<8x32xf32>
    %49 = arith.addf %47, %48 : vector<8x32xf32>
    %50 = math.tanh %49 : vector<8x32xf32>
    %cst_24 = arith.constant dense<0.000000e+00> : vector<8x16xf32>
    %51 = tpu.matmul %50, %16, %cst_24 {dimension_numbers = #tpu.dot_dimension_numbers<[1], [0], [0], [1], [0, 0, 1, 1], [], []>} : vector<8x32xf32>, vector<32x16xf32>, vector<8x16xf32> -> vector<8x16xf32>
    %52 = arith.addf %45, %51 : vector<8x16xf32>
    %53 = vector.broadcast %18 : vector<1x16xf32> to vector<8x16xf32>
    %54 = arith.addf %52, %53 : vector<8x16xf32>
    %55 = vector.extract_strided_slice %10 {offsets = [4, 0], sizes = [1, 32], strides = [1, 1]} : vector<24x32xf32> to vector<1x32xf32>
    %cst_25 = arith.constant dense<0.000000e+00> : vector<8x32xf32>
    %56 = tpu.matmul %54, %0, %cst_25 {dimension_numbers = #tpu.dot_dimension_numbers<[1], [0], [0], [1], [0, 0, 1, 1], [], []>} : vector<8x16xf32>, vector<16x32xf32>, vector<8x32xf32> -> vector<8x32xf32>
    %57 = vector.broadcast %55 : vector<1x32xf32> to vector<8x32xf32>
    %58 = arith.addf %56, %57 : vector<8x32xf32>
    %59 = math.tanh %58 : vector<8x32xf32>
    %cst_26 = arith.constant dense<0.000000e+00> : vector<8x16xf32>
    %60 = tpu.matmul %59, %16, %cst_26 {dimension_numbers = #tpu.dot_dimension_numbers<[1], [0], [0], [1], [0, 0, 1, 1], [], []>} : vector<8x32xf32>, vector<32x16xf32>, vector<8x16xf32> -> vector<8x16xf32>
    %61 = arith.addf %54, %60 : vector<8x16xf32>
    %62 = vector.broadcast %18 : vector<1x16xf32> to vector<8x16xf32>
    %63 = arith.addf %61, %62 : vector<8x16xf32>
    %64 = vector.extract_strided_slice %10 {offsets = [5, 0], sizes = [1, 32], strides = [1, 1]} : vector<24x32xf32> to vector<1x32xf32>
    %cst_27 = arith.constant dense<0.000000e+00> : vector<8x32xf32>
    %65 = tpu.matmul %63, %0, %cst_27 {dimension_numbers = #tpu.dot_dimension_numbers<[1], [0], [0], [1], [0, 0, 1, 1], [], []>} : vector<8x16xf32>, vector<16x32xf32>, vector<8x32xf32> -> vector<8x32xf32>
    %66 = vector.broadcast %64 : vector<1x32xf32> to vector<8x32xf32>
    %67 = arith.addf %65, %66 : vector<8x32xf32>
    %68 = math.tanh %67 : vector<8x32xf32>
    %cst_28 = arith.constant dense<0.000000e+00> : vector<8x16xf32>
    %69 = tpu.matmul %68, %16, %cst_28 {dimension_numbers = #tpu.dot_dimension_numbers<[1], [0], [0], [1], [0, 0, 1, 1], [], []>} : vector<8x32xf32>, vector<32x16xf32>, vector<8x16xf32> -> vector<8x16xf32>
    %70 = arith.addf %63, %69 : vector<8x16xf32>
    %71 = vector.broadcast %18 : vector<1x16xf32> to vector<8x16xf32>
    %72 = arith.addf %70, %71 : vector<8x16xf32>
    %73 = vector.extract_strided_slice %10 {offsets = [6, 0], sizes = [1, 32], strides = [1, 1]} : vector<24x32xf32> to vector<1x32xf32>
    %cst_29 = arith.constant dense<0.000000e+00> : vector<8x32xf32>
    %74 = tpu.matmul %72, %0, %cst_29 {dimension_numbers = #tpu.dot_dimension_numbers<[1], [0], [0], [1], [0, 0, 1, 1], [], []>} : vector<8x16xf32>, vector<16x32xf32>, vector<8x32xf32> -> vector<8x32xf32>
    %75 = vector.broadcast %73 : vector<1x32xf32> to vector<8x32xf32>
    %76 = arith.addf %74, %75 : vector<8x32xf32>
    %77 = math.tanh %76 : vector<8x32xf32>
    %cst_30 = arith.constant dense<0.000000e+00> : vector<8x16xf32>
    %78 = tpu.matmul %77, %16, %cst_30 {dimension_numbers = #tpu.dot_dimension_numbers<[1], [0], [0], [1], [0, 0, 1, 1], [], []>} : vector<8x32xf32>, vector<32x16xf32>, vector<8x16xf32> -> vector<8x16xf32>
    %79 = arith.addf %72, %78 : vector<8x16xf32>
    %80 = vector.broadcast %18 : vector<1x16xf32> to vector<8x16xf32>
    %81 = arith.addf %79, %80 : vector<8x16xf32>
    %82 = vector.extract_strided_slice %10 {offsets = [7, 0], sizes = [1, 32], strides = [1, 1]} : vector<24x32xf32> to vector<1x32xf32>
    %cst_31 = arith.constant dense<0.000000e+00> : vector<8x32xf32>
    %83 = tpu.matmul %81, %0, %cst_31 {dimension_numbers = #tpu.dot_dimension_numbers<[1], [0], [0], [1], [0, 0, 1, 1], [], []>} : vector<8x16xf32>, vector<16x32xf32>, vector<8x32xf32> -> vector<8x32xf32>
    %84 = vector.broadcast %82 : vector<1x32xf32> to vector<8x32xf32>
    %85 = arith.addf %83, %84 : vector<8x32xf32>
    %86 = math.tanh %85 : vector<8x32xf32>
    %cst_32 = arith.constant dense<0.000000e+00> : vector<8x16xf32>
    %87 = tpu.matmul %86, %16, %cst_32 {dimension_numbers = #tpu.dot_dimension_numbers<[1], [0], [0], [1], [0, 0, 1, 1], [], []>} : vector<8x32xf32>, vector<32x16xf32>, vector<8x16xf32> -> vector<8x16xf32>
    %88 = arith.addf %81, %87 : vector<8x16xf32>
    %89 = vector.broadcast %18 : vector<1x16xf32> to vector<8x16xf32>
    %90 = arith.addf %88, %89 : vector<8x16xf32>
    %91 = vector.extract_strided_slice %10 {offsets = [8, 0], sizes = [1, 32], strides = [1, 1]} : vector<24x32xf32> to vector<1x32xf32>
    %cst_33 = arith.constant dense<0.000000e+00> : vector<8x32xf32>
    %92 = tpu.matmul %90, %0, %cst_33 {dimension_numbers = #tpu.dot_dimension_numbers<[1], [0], [0], [1], [0, 0, 1, 1], [], []>} : vector<8x16xf32>, vector<16x32xf32>, vector<8x32xf32> -> vector<8x32xf32>
    %93 = vector.broadcast %91 : vector<1x32xf32> to vector<8x32xf32>
    %94 = arith.addf %92, %93 : vector<8x32xf32>
    %95 = math.tanh %94 : vector<8x32xf32>
    %cst_34 = arith.constant dense<0.000000e+00> : vector<8x16xf32>
    %96 = tpu.matmul %95, %16, %cst_34 {dimension_numbers = #tpu.dot_dimension_numbers<[1], [0], [0], [1], [0, 0, 1, 1], [], []>} : vector<8x32xf32>, vector<32x16xf32>, vector<8x16xf32> -> vector<8x16xf32>
    %97 = arith.addf %90, %96 : vector<8x16xf32>
    %98 = vector.broadcast %18 : vector<1x16xf32> to vector<8x16xf32>
    %99 = arith.addf %97, %98 : vector<8x16xf32>
    %100 = vector.extract_strided_slice %10 {offsets = [9, 0], sizes = [1, 32], strides = [1, 1]} : vector<24x32xf32> to vector<1x32xf32>
    %cst_35 = arith.constant dense<0.000000e+00> : vector<8x32xf32>
    %101 = tpu.matmul %99, %0, %cst_35 {dimension_numbers = #tpu.dot_dimension_numbers<[1], [0], [0], [1], [0, 0, 1, 1], [], []>} : vector<8x16xf32>, vector<16x32xf32>, vector<8x32xf32> -> vector<8x32xf32>
    %102 = vector.broadcast %100 : vector<1x32xf32> to vector<8x32xf32>
    %103 = arith.addf %101, %102 : vector<8x32xf32>
    %104 = math.tanh %103 : vector<8x32xf32>
    %cst_36 = arith.constant dense<0.000000e+00> : vector<8x16xf32>
    %105 = tpu.matmul %104, %16, %cst_36 {dimension_numbers = #tpu.dot_dimension_numbers<[1], [0], [0], [1], [0, 0, 1, 1], [], []>} : vector<8x32xf32>, vector<32x16xf32>, vector<8x16xf32> -> vector<8x16xf32>
    %106 = arith.addf %99, %105 : vector<8x16xf32>
    %107 = vector.broadcast %18 : vector<1x16xf32> to vector<8x16xf32>
    %108 = arith.addf %106, %107 : vector<8x16xf32>
    %109 = vector.extract_strided_slice %10 {offsets = [10, 0], sizes = [1, 32], strides = [1, 1]} : vector<24x32xf32> to vector<1x32xf32>
    %cst_37 = arith.constant dense<0.000000e+00> : vector<8x32xf32>
    %110 = tpu.matmul %108, %0, %cst_37 {dimension_numbers = #tpu.dot_dimension_numbers<[1], [0], [0], [1], [0, 0, 1, 1], [], []>} : vector<8x16xf32>, vector<16x32xf32>, vector<8x32xf32> -> vector<8x32xf32>
    %111 = vector.broadcast %109 : vector<1x32xf32> to vector<8x32xf32>
    %112 = arith.addf %110, %111 : vector<8x32xf32>
    %113 = math.tanh %112 : vector<8x32xf32>
    %cst_38 = arith.constant dense<0.000000e+00> : vector<8x16xf32>
    %114 = tpu.matmul %113, %16, %cst_38 {dimension_numbers = #tpu.dot_dimension_numbers<[1], [0], [0], [1], [0, 0, 1, 1], [], []>} : vector<8x32xf32>, vector<32x16xf32>, vector<8x16xf32> -> vector<8x16xf32>
    %115 = arith.addf %108, %114 : vector<8x16xf32>
    %116 = vector.broadcast %18 : vector<1x16xf32> to vector<8x16xf32>
    %117 = arith.addf %115, %116 : vector<8x16xf32>
    %118 = vector.extract_strided_slice %10 {offsets = [11, 0], sizes = [1, 32], strides = [1, 1]} : vector<24x32xf32> to vector<1x32xf32>
    %cst_39 = arith.constant dense<0.000000e+00> : vector<8x32xf32>
    %119 = tpu.matmul %117, %0, %cst_39 {dimension_numbers = #tpu.dot_dimension_numbers<[1], [0], [0], [1], [0, 0, 1, 1], [], []>} : vector<8x16xf32>, vector<16x32xf32>, vector<8x32xf32> -> vector<8x32xf32>
    %120 = vector.broadcast %118 : vector<1x32xf32> to vector<8x32xf32>
    %121 = arith.addf %119, %120 : vector<8x32xf32>
    %122 = math.tanh %121 : vector<8x32xf32>
    %cst_40 = arith.constant dense<0.000000e+00> : vector<8x16xf32>
    %123 = tpu.matmul %122, %16, %cst_40 {dimension_numbers = #tpu.dot_dimension_numbers<[1], [0], [0], [1], [0, 0, 1, 1], [], []>} : vector<8x32xf32>, vector<32x16xf32>, vector<8x16xf32> -> vector<8x16xf32>
    %124 = arith.addf %117, %123 : vector<8x16xf32>
    %125 = vector.broadcast %18 : vector<1x16xf32> to vector<8x16xf32>
    %126 = arith.addf %124, %125 : vector<8x16xf32>
    %127 = vector.extract_strided_slice %10 {offsets = [12, 0], sizes = [1, 32], strides = [1, 1]} : vector<24x32xf32> to vector<1x32xf32>
    %cst_41 = arith.constant dense<0.000000e+00> : vector<8x32xf32>
    %128 = tpu.matmul %126, %0, %cst_41 {dimension_numbers = #tpu.dot_dimension_numbers<[1], [0], [0], [1], [0, 0, 1, 1], [], []>} : vector<8x16xf32>, vector<16x32xf32>, vector<8x32xf32> -> vector<8x32xf32>
    %129 = vector.broadcast %127 : vector<1x32xf32> to vector<8x32xf32>
    %130 = arith.addf %128, %129 : vector<8x32xf32>
    %131 = math.tanh %130 : vector<8x32xf32>
    %cst_42 = arith.constant dense<0.000000e+00> : vector<8x16xf32>
    %132 = tpu.matmul %131, %16, %cst_42 {dimension_numbers = #tpu.dot_dimension_numbers<[1], [0], [0], [1], [0, 0, 1, 1], [], []>} : vector<8x32xf32>, vector<32x16xf32>, vector<8x16xf32> -> vector<8x16xf32>
    %133 = arith.addf %126, %132 : vector<8x16xf32>
    %134 = vector.broadcast %18 : vector<1x16xf32> to vector<8x16xf32>
    %135 = arith.addf %133, %134 : vector<8x16xf32>
    %136 = vector.extract_strided_slice %10 {offsets = [13, 0], sizes = [1, 32], strides = [1, 1]} : vector<24x32xf32> to vector<1x32xf32>
    %cst_43 = arith.constant dense<0.000000e+00> : vector<8x32xf32>
    %137 = tpu.matmul %135, %0, %cst_43 {dimension_numbers = #tpu.dot_dimension_numbers<[1], [0], [0], [1], [0, 0, 1, 1], [], []>} : vector<8x16xf32>, vector<16x32xf32>, vector<8x32xf32> -> vector<8x32xf32>
    %138 = vector.broadcast %136 : vector<1x32xf32> to vector<8x32xf32>
    %139 = arith.addf %137, %138 : vector<8x32xf32>
    %140 = math.tanh %139 : vector<8x32xf32>
    %cst_44 = arith.constant dense<0.000000e+00> : vector<8x16xf32>
    %141 = tpu.matmul %140, %16, %cst_44 {dimension_numbers = #tpu.dot_dimension_numbers<[1], [0], [0], [1], [0, 0, 1, 1], [], []>} : vector<8x32xf32>, vector<32x16xf32>, vector<8x16xf32> -> vector<8x16xf32>
    %142 = arith.addf %135, %141 : vector<8x16xf32>
    %143 = vector.broadcast %18 : vector<1x16xf32> to vector<8x16xf32>
    %144 = arith.addf %142, %143 : vector<8x16xf32>
    %145 = vector.extract_strided_slice %10 {offsets = [14, 0], sizes = [1, 32], strides = [1, 1]} : vector<24x32xf32> to vector<1x32xf32>
    %cst_45 = arith.constant dense<0.000000e+00> : vector<8x32xf32>
    %146 = tpu.matmul %144, %0, %cst_45 {dimension_numbers = #tpu.dot_dimension_numbers<[1], [0], [0], [1], [0, 0, 1, 1], [], []>} : vector<8x16xf32>, vector<16x32xf32>, vector<8x32xf32> -> vector<8x32xf32>
    %147 = vector.broadcast %145 : vector<1x32xf32> to vector<8x32xf32>
    %148 = arith.addf %146, %147 : vector<8x32xf32>
    %149 = math.tanh %148 : vector<8x32xf32>
    %cst_46 = arith.constant dense<0.000000e+00> : vector<8x16xf32>
    %150 = tpu.matmul %149, %16, %cst_46 {dimension_numbers = #tpu.dot_dimension_numbers<[1], [0], [0], [1], [0, 0, 1, 1], [], []>} : vector<8x32xf32>, vector<32x16xf32>, vector<8x16xf32> -> vector<8x16xf32>
    %151 = arith.addf %144, %150 : vector<8x16xf32>
    %152 = vector.broadcast %18 : vector<1x16xf32> to vector<8x16xf32>
    %153 = arith.addf %151, %152 : vector<8x16xf32>
    %154 = vector.extract_strided_slice %10 {offsets = [15, 0], sizes = [1, 32], strides = [1, 1]} : vector<24x32xf32> to vector<1x32xf32>
    %cst_47 = arith.constant dense<0.000000e+00> : vector<8x32xf32>
    %155 = tpu.matmul %153, %0, %cst_47 {dimension_numbers = #tpu.dot_dimension_numbers<[1], [0], [0], [1], [0, 0, 1, 1], [], []>} : vector<8x16xf32>, vector<16x32xf32>, vector<8x32xf32> -> vector<8x32xf32>
    %156 = vector.broadcast %154 : vector<1x32xf32> to vector<8x32xf32>
    %157 = arith.addf %155, %156 : vector<8x32xf32>
    %158 = math.tanh %157 : vector<8x32xf32>
    %cst_48 = arith.constant dense<0.000000e+00> : vector<8x16xf32>
    %159 = tpu.matmul %158, %16, %cst_48 {dimension_numbers = #tpu.dot_dimension_numbers<[1], [0], [0], [1], [0, 0, 1, 1], [], []>} : vector<8x32xf32>, vector<32x16xf32>, vector<8x16xf32> -> vector<8x16xf32>
    %160 = arith.addf %153, %159 : vector<8x16xf32>
    %161 = vector.broadcast %18 : vector<1x16xf32> to vector<8x16xf32>
    %162 = arith.addf %160, %161 : vector<8x16xf32>
    %163 = vector.extract_strided_slice %10 {offsets = [16, 0], sizes = [1, 32], strides = [1, 1]} : vector<24x32xf32> to vector<1x32xf32>
    %cst_49 = arith.constant dense<0.000000e+00> : vector<8x32xf32>
    %164 = tpu.matmul %162, %0, %cst_49 {dimension_numbers = #tpu.dot_dimension_numbers<[1], [0], [0], [1], [0, 0, 1, 1], [], []>} : vector<8x16xf32>, vector<16x32xf32>, vector<8x32xf32> -> vector<8x32xf32>
    %165 = vector.broadcast %163 : vector<1x32xf32> to vector<8x32xf32>
    %166 = arith.addf %164, %165 : vector<8x32xf32>
    %167 = math.tanh %166 : vector<8x32xf32>
    %cst_50 = arith.constant dense<0.000000e+00> : vector<8x16xf32>
    %168 = tpu.matmul %167, %16, %cst_50 {dimension_numbers = #tpu.dot_dimension_numbers<[1], [0], [0], [1], [0, 0, 1, 1], [], []>} : vector<8x32xf32>, vector<32x16xf32>, vector<8x16xf32> -> vector<8x16xf32>
    %169 = arith.addf %162, %168 : vector<8x16xf32>
    %170 = vector.broadcast %18 : vector<1x16xf32> to vector<8x16xf32>
    %171 = arith.addf %169, %170 : vector<8x16xf32>
    %172 = vector.extract_strided_slice %10 {offsets = [17, 0], sizes = [1, 32], strides = [1, 1]} : vector<24x32xf32> to vector<1x32xf32>
    %cst_51 = arith.constant dense<0.000000e+00> : vector<8x32xf32>
    %173 = tpu.matmul %171, %0, %cst_51 {dimension_numbers = #tpu.dot_dimension_numbers<[1], [0], [0], [1], [0, 0, 1, 1], [], []>} : vector<8x16xf32>, vector<16x32xf32>, vector<8x32xf32> -> vector<8x32xf32>
    %174 = vector.broadcast %172 : vector<1x32xf32> to vector<8x32xf32>
    %175 = arith.addf %173, %174 : vector<8x32xf32>
    %176 = math.tanh %175 : vector<8x32xf32>
    %cst_52 = arith.constant dense<0.000000e+00> : vector<8x16xf32>
    %177 = tpu.matmul %176, %16, %cst_52 {dimension_numbers = #tpu.dot_dimension_numbers<[1], [0], [0], [1], [0, 0, 1, 1], [], []>} : vector<8x32xf32>, vector<32x16xf32>, vector<8x16xf32> -> vector<8x16xf32>
    %178 = arith.addf %171, %177 : vector<8x16xf32>
    %179 = vector.broadcast %18 : vector<1x16xf32> to vector<8x16xf32>
    %180 = arith.addf %178, %179 : vector<8x16xf32>
    %181 = vector.extract_strided_slice %10 {offsets = [18, 0], sizes = [1, 32], strides = [1, 1]} : vector<24x32xf32> to vector<1x32xf32>
    %cst_53 = arith.constant dense<0.000000e+00> : vector<8x32xf32>
    %182 = tpu.matmul %180, %0, %cst_53 {dimension_numbers = #tpu.dot_dimension_numbers<[1], [0], [0], [1], [0, 0, 1, 1], [], []>} : vector<8x16xf32>, vector<16x32xf32>, vector<8x32xf32> -> vector<8x32xf32>
    %183 = vector.broadcast %181 : vector<1x32xf32> to vector<8x32xf32>
    %184 = arith.addf %182, %183 : vector<8x32xf32>
    %185 = math.tanh %184 : vector<8x32xf32>
    %cst_54 = arith.constant dense<0.000000e+00> : vector<8x16xf32>
    %186 = tpu.matmul %185, %16, %cst_54 {dimension_numbers = #tpu.dot_dimension_numbers<[1], [0], [0], [1], [0, 0, 1, 1], [], []>} : vector<8x32xf32>, vector<32x16xf32>, vector<8x16xf32> -> vector<8x16xf32>
    %187 = arith.addf %180, %186 : vector<8x16xf32>
    %188 = vector.broadcast %18 : vector<1x16xf32> to vector<8x16xf32>
    %189 = arith.addf %187, %188 : vector<8x16xf32>
    %190 = vector.extract_strided_slice %10 {offsets = [19, 0], sizes = [1, 32], strides = [1, 1]} : vector<24x32xf32> to vector<1x32xf32>
    %cst_55 = arith.constant dense<0.000000e+00> : vector<8x32xf32>
    %191 = tpu.matmul %189, %0, %cst_55 {dimension_numbers = #tpu.dot_dimension_numbers<[1], [0], [0], [1], [0, 0, 1, 1], [], []>} : vector<8x16xf32>, vector<16x32xf32>, vector<8x32xf32> -> vector<8x32xf32>
    %192 = vector.broadcast %190 : vector<1x32xf32> to vector<8x32xf32>
    %193 = arith.addf %191, %192 : vector<8x32xf32>
    %194 = math.tanh %193 : vector<8x32xf32>
    %cst_56 = arith.constant dense<0.000000e+00> : vector<8x16xf32>
    %195 = tpu.matmul %194, %16, %cst_56 {dimension_numbers = #tpu.dot_dimension_numbers<[1], [0], [0], [1], [0, 0, 1, 1], [], []>} : vector<8x32xf32>, vector<32x16xf32>, vector<8x16xf32> -> vector<8x16xf32>
    %196 = arith.addf %189, %195 : vector<8x16xf32>
    %197 = vector.broadcast %18 : vector<1x16xf32> to vector<8x16xf32>
    %198 = arith.addf %196, %197 : vector<8x16xf32>
    %c1 = arith.constant 1 : index
    %c0_57 = arith.constant 0 : index
    %c0_58 = arith.constant 0 : index
    %199 = vector.load %arg8[%c1, %c0_57, %c0_58] : memref<2x8x16xf32, #tpu.memory_space<vmem>>, vector<1x8x16xf32>
    %200 = vector.shape_cast %199 : vector<1x8x16xf32> to vector<8x16xf32>
    %201 = vector.shape_cast %198 : vector<8x16xf32> to vector<1x8x16xf32>
    tpu.vector_store %arg8[%c1, %c0_57, %c0_58], %201 {strides = array<i32>} : memref<2x8x16xf32, #tpu.memory_space<vmem>>, vector<1x8x16xf32>,
    return
  }
  func.func @transform_0(%arg0: i32) -> (i32, i32) {
    %c0_i32 = arith.constant 0 : i32
    %c0_i32_0 = arith.constant 0 : i32
    %c0_i32_1 = arith.constant 0 : i32
    return %c0_i32, %c0_i32_0 : i32, i32
  }
  func.func @transform_1(%arg0: i32) -> (i32, i32) {
    %c0_i32 = arith.constant 0 : i32
    %c0_i32_0 = arith.constant 0 : i32
    %c0_i32_1 = arith.constant 0 : i32
    return %c0_i32, %c0_i32_0 : i32, i32
  }
  func.func @transform_2(%arg0: i32) -> (i32, i32) {
    %c0_i32 = arith.constant 0 : i32
    %c0_i32_0 = arith.constant 0 : i32
    %c0_i32_1 = arith.constant 0 : i32
    return %c0_i32, %c0_i32_0 : i32, i32
  }
  func.func @transform_3(%arg0: i32) -> (i32, i32) {
    %c0_i32 = arith.constant 0 : i32
    %c0_i32_0 = arith.constant 0 : i32
    %c0_i32_1 = arith.constant 0 : i32
    return %c0_i32, %c0_i32_0 : i32, i32
  }
  func.func @transform_4(%arg0: i32) -> (i32, i32) {
    %c0_i32 = arith.constant 0 : i32
    %c0_i32_0 = arith.constant 0 : i32
    %c0_i32_1 = arith.constant 0 : i32
    return %c0_i32, %c0_i32_0 : i32, i32
  }
  func.func @transform_5(%arg0: i32) -> (i32, i32) {
    %c0_i32 = arith.constant 0 : i32
    %c0_i32_0 = arith.constant 0 : i32
    %c0_i32_1 = arith.constant 0 : i32
    return %c0_i32, %c0_i32_0 : i32, i32
  }
  func.func @transform_6(%arg0: i32) -> (i32, i32) {
    %c0_i32 = arith.constant 0 : i32
    %c0_i32_0 = arith.constant 0 : i32
    %c0_i32_1 = arith.constant 0 : i32
    return %c0_i32, %c0_i32_0 : i32, i32
  }
  func.func @transform_7(%arg0: i32) -> (i32, i32, i32) {
    %c0_i32 = arith.constant 0 : i32
    %c0_i32_0 = arith.constant 0 : i32
    %c0_i32_1 = arith.constant 0 : i32
    %c0_i32_2 = arith.constant 0 : i32
    return %c0_i32, %c0_i32_0, %c0_i32_1 : i32, i32, i32
  }
}

</mosaic_0001>

<bundles_post_ra>
// kernel: _integrate.1
= control target key start
LH: loop header
LB: loop body
LE: loop exit
PB: predicated region body
PF: predicated region fallthrough
CT: control target
= control target key end

     0   :  { %v3980_v2 = vmov 0.0|0.0   ;;  %vm3981_vm0 = vmmov 0   ;;  %v3982_v4 = vmov 0.0   ;;  %vm73_vm1 = vcmask 130048   ;;  %s4442_s0 = inlined_call_operand.vmem [shape: f32[24,1], index: 0, kind: input, shape index: {}]   ;;  %s4443_s1 = inlined_call_operand.vmem [shape: f32[8,16], index: 1, kind: input, shape index: {}]   ;;  %s4444_s2 = inlined_call_operand.vmem [shape: f32[16,32], index: 2, kind: input, shape index: {}]   ;;  %s4445_s3 = inlined_call_operand.vmem [shape: f32[1,32], index: 3, kind: input, shape index: {}]   ;;  %s4446_s4 = inlined_call_operand.vmem [shape: f32[1,32], index: 4, kind: input, shape index: {}]   ;;  %s4447_s5 = inlined_call_operand.vmem [shape: f32[32,16], index: 5, kind: input, shape index: {}]   ;;  %s4448_s6 = inlined_call_operand.vmem [shape: f32[1,16], index: 6, kind: input, shape index: {}]   ;;  %s4449_s7 = inlined_call_operand.hbm [shape: f32[2,8,16], index: 7, kind: output, shape index: {}]  }
   0x1   :  { %v27_v0 = vld [vmem:[%s4444_s2] sm:$0xff]  ;;  %v28_v1 = vld [vmem:[%s4444_s2 + $0x8] sm:$0xff]  ;;  %3727 = vmatprep.subr.bf16.mxu1 %v3980_v2  ;;  %3371 = vmatprep.mubr.msk.f32.mxu1 %vm3981_vm0, %v3982_v4 }
   0x2   :  { %v4034_v3 = vpack.c.bf16 %v28_v1, %v27_v0  ;;  %v4041_v5 = vld [vmem:[%s4443_s1] sm:$0xff] }
   0x3   :  { %v36_v6 = vld [vmem:[%s4442_s0] sm:$0xff] }
   0x4   :  { %12 = vsyncpa [#allocation3], 0  ;;  %74 = vst.msk [vmem:[#allocation2] sm:$0xff] %vm73_vm1, %v4041_v5  ;;  %v3983_v7 = vmov 0   ;;  %3736 = vmatprep.subr.bf16.mxu0 %v3980_v2  ;;  %3729 = vmatpush3.bf16.msra.mxu1 %v4034_v3  ;;  %v37_v8 = vld [vmem:[%s4442_s0 + $0x8] sm:$0xff]  ;;  %v31_v9 = vld [vmem:[%s4447_s5] sm:$0xff]  ;;  %v80_v19 = vlaneseq }
   0x5   :  { %3914 = vset.pattern.permute.xlu0 %v3983_v7  ;;  %3730 = vmatprep.subr.bf16.mxu1 %v3980_v2  ;;  %v32_v10 = vld [vmem:[%s4447_s5 + $0x8] sm:$0xff]  ;;  %v75_v11 = vmul.f32 0.05, %v31_v9  ;;  %v33_v13 = vld [vmem:[%s4447_s5 + $0x10] sm:$0xff]  ;;  %v34_v14 = vld [vmem:[%s4447_s5 + $0x18] sm:$0xff]  ;;  %vm158_vm2 = vcmask 261120  }
   0x6   :  { %41 = vperm.xlu0 %3914, %v36_v6   ;;  %3738 = vmatpush3.bf16.msra.mxu0 %v4034_v3  ;;  %v76_v12 = vmul.f32 0.05, %v32_v10  ;;  %v77_v15 = vmul.f32 0.05, %v33_v13  ;;  %v78_v16 = vmul.f32 0.05, %v34_v14 }
   0x7   :  { %3389 = vmatprep.mubr.msk.f32.mxu0 %vm3981_vm0, %v3982_v4  ;;  %3739 = vmatprep.subr.bf16.mxu0 %v3980_v2  ;;  %v4085_v21 = vld [vmem:[%s4445_s3] ss:$0 sm:$0xff]  ;;  %v4087_v22 = vshrl.u32 %v80_v19, 7 }
   0x8   :  { %3372 = vmatmul.mubr.msk.f32.vlgmr.msra.gmra.mrb[0].mxu1 %vm73_vm1, %v4041_v5  ;;  %3915 = vset.pattern.permute.xlu1 %v3983_v7  ;;  %v4074_v17 = vpack.c.bf16 %v76_v12, %v75_v11  ;;  %v4077_v18 = vpack.c.bf16 %v78_v16, %v77_v15  ;;  %v4092_v23 = vld [vmem:[%s4446_s4] ss:$0 sm:$0xff] }
   0x9   :  { %3382 = vmatprep.mubr.msk.f32.mxu1 %vm3981_vm0, %v3982_v4  ;;  %v701_v26 = vsub.s32 4, %v4087_v22  ;;  %v854_v27 = vsub.s32 5, %v4087_v22  ;;  %v1007_v28 = vsub.s32 6, %v4087_v22  ;;  %v1160_v29 = vsub.s32 7, %v4087_v22  ;;  %v35_v43 = vld [vmem:[%s4448_s6] sm:$0x1] }
   0xa   :  { %46 = vperm.xlu0 %3914, %v37_v8   ;;  %3732 = vmatpush3.bf16.msra.mxu1 %v4074_v17  ;;  %v4127_v37 = vsub.s32 0, %v4087_v22  ;;  %v79_v44 = vmul.f32 0.05, %v35_v43  ;;  %v4152_v50 = vsub.s32 1, %v4087_v22  ;;  %v4170_v60 = vsub.s32 2, %v4087_v22 }
   0xb   :  { %3733 = vmatprep.subr.bf16.mxu1 %v3980_v2  ;;  %v4188_v9 = vsub.s32 3, %v4087_v22 }
   0xc   :  { %v4140_v45 = vrot.slane %v79_v44, %v4127_v37 }
   0xe   :  { %3735 = vmatpush3.bf16.msra.mxu1 %v4077_v18 }
   0xf   :  { %3745 = vmatprep.subr.bf16.mxu1 %v3980_v2 }
  0x85   :  { %v42_v20 = vpop.permute.xlu0 %41 }
  0x86   :  { %v60_v35 = vmul.f32 %v4085_v21, %v42_v20 }
  0x88   :  { %v4124_v36 = vadd.f32 %v4092_v23, %v60_v35 }
  0x89   :  { %v47_v24 = vpop.permute.xlu0 %46 }
  0x8a   :  { %v61_v25 = vmul.f32 %v4085_v21, %v47_v24  ;;  %v83_v38 = vrot.slane %v4124_v36, %v4127_v37  ;;  %v243_v51 = vrot.slane %v4124_v36, %v4152_v50  ;;  %v396_v61 = vrot.slane %v4124_v36, %v4170_v60 }
  0x8b   :  { %v549_v10 = vrot.slane %v4124_v36, %v4188_v9  ;;  %v702_v24 = vrot.slane %v4124_v36, %v701_v26 }
  0x8c   :  { %v4100_v30 = vadd.f32 %v4092_v23, %v61_v25 }
  0x8e   :  { %v4105_v31 = vrot.slane %v4100_v30, %v701_v26  ;;  %v4110_v32 = vrot.slane %v4100_v30, %v854_v27  ;;  %v4115_v33 = vrot.slane %v4100_v30, %v1007_v28  ;;  %v4120_v34 = vrot.slane %v4100_v30, %v1160_v29 }
  0x8f   :  { %v855_v26 = vrot.slane %v4124_v36, %v854_v27  ;;  %v1008_v27 = vrot.slane %v4124_v36, %v1007_v28  ;;  %v1161_v28 = vrot.slane %v4124_v36, %v1160_v29  ;;  %v1314_v29 = vrot.slane %v4100_v30, %v4127_v37 }
  0xdb   :  { %v153_v39 = vpop.f32.mrb[0].mxu1 }
  0xdc   :  { %v154_v40 = vadd.f32 %v153_v39, %v83_v38  ;;  %v3373_v41 = vpop.f32.mrb[1].mxu1 }
  0xde   :  { %3916 = vtanh.f32 %v154_v40 }
  0xe8   :  { %v3917_v42 = vpop.eup %3916 }
  0xe9   :  { %3383 = vmatmul.mubr.msk.f32.vlgmr.msra.gmra.mrb[2].mxu1 %vm158_vm2, %v3917_v42 }
  0xea   :  { %3747 = vmatpush3.bf16.msra.mxu1 %v4034_v3  ;;  %3407 = vmatprep.mubr.msk.f32.mxu1 %vm3981_vm0, %v3982_v4 }
  0xeb   :  { %3748 = vmatprep.subr.bf16.mxu1 %v3980_v2 }
 0x1bc   :  { %v228_v46 = vpop.f32.mrb[2].mxu1 }
 0x1bd   :  { %v232_v47 = vadd.f32 %v228_v46, %v4041_v5  ;;  %v3384_v48 = vpop.f32.mrb[3].mxu1 }
 0x1bf   :  { %v239_v49 = vadd.f32 %v4140_v45, %v232_v47 }
 0x1c1   :  { %3390 = vmatmul.mubr.msk.f32.vlgmr.msra.gmra.mrb[0].mxu0 %vm73_vm1, %v239_v49 }
 0x1c2   :  { %3741 = vmatpush3.bf16.msra.mxu0 %v4074_v17  ;;  %3400 = vmatprep.mubr.msk.f32.mxu0 %vm3981_vm0, %v3982_v4 }
 0x1c3   :  { %3742 = vmatprep.subr.bf16.mxu0 %v3980_v2 }
 0x1c6   :  { %3744 = vmatpush3.bf16.msra.mxu0 %v4077_v18 }
 0x1c7   :  { %3754 = vmatprep.subr.bf16.mxu0 %v3980_v2 }
 0x294   :  { %v313_v52 = vpop.f32.mrb[0].mxu0 }
 0x295   :  { %v314_v53 = vadd.f32 %v313_v52, %v243_v51  ;;  %v3391_v54 = vpop.f32.mrb[1].mxu0 }
 0x297   :  { %3918 = vtanh.f32 %v314_v53 }
 0x2a1   :  { %v3919_v55 = vpop.eup %3918 }
 0x2a2   :  { %3401 = vmatmul.mubr.msk.f32.vlgmr.msra.gmra.mrb[2].mxu0 %vm158_vm2, %v3919_v55 }
 0x2a3   :  { %3756 = vmatpush3.bf16.msra.mxu0 %v4034_v3  ;;  %3425 = vmatprep.mubr.msk.f32.mxu0 %vm3981_vm0, %v3982_v4 }
 0x2a4   :  { %3757 = vmatprep.subr.bf16.mxu0 %v3980_v2 }
 0x375   :  { %v387_v56 = vpop.f32.mrb[2].mxu0 }
 0x376   :  { %v391_v57 = vadd.f32 %v387_v56, %v239_v49  ;;  %v3402_v58 = vpop.f32.mrb[3].mxu0 }
 0x378   :  { %v392_v59 = vadd.f32 %v391_v57, %v4140_v45 }
 0x37a   :  { %3408 = vmatmul.mubr.msk.f32.vlgmr.msra.gmra.mrb[4].mxu1 %vm73_vm1, %v392_v59 }
 0x37b   :  { %3750 = vmatpush3.bf16.msra.mxu1 %v4074_v17  ;;  %3418 = vmatprep.mubr.msk.f32.mxu1 %vm3981_vm0, %v3982_v4 }
 0x37c   :  { %3751 = vmatprep.subr.bf16.mxu1 %v3980_v2 }
 0x37f   :  { %3753 = vmatpush3.bf16.msra.mxu1 %v4077_v18 }
 0x380   :  { %3763 = vmatprep.subr.bf16.mxu1 %v3980_v2 }
 0x44d   :  { %v466_v62 = vpop.f32.mrb[4].mxu1 }
 0x44e   :  { %v467_v63 = vadd.f32 %v466_v62, %v396_v61  ;;  %v3409_v0 = vpop.f32.mrb[5].mxu1 }
 0x450   :  { %3920 = vtanh.f32 %v467_v63 }
 0x45a   :  { %v3921_v1 = vpop.eup %3920 }
 0x45b   :  { %3419 = vmatmul.mubr.msk.f32.vlgmr.msra.gmra.mrb[6].mxu1 %vm158_vm2, %v3921_v1 }
 0x45c   :  { %3765 = vmatpush3.bf16.msra.mxu1 %v4034_v3  ;;  %3443 = vmatprep.mubr.msk.f32.mxu1 %vm3981_vm0, %v3982_v4 }
 0x45d   :  { %3766 = vmatprep.subr.bf16.mxu1 %v3980_v2 }
 0x52e   :  { %v540_v5 = vpop.f32.mrb[6].mxu1 }
 0x52f   :  { %v544_v6 = vadd.f32 %v540_v5, %v392_v59  ;;  %v3420_v7 = vpop.f32.mrb[7].mxu1 }
 0x531   :  { %v545_v8 = vadd.f32 %v544_v6, %v4140_v45 }
 0x533   :  { %3426 = vmatmul.mubr.msk.f32.vlgmr.msra.gmra.mrb[4].mxu0 %vm73_vm1, %v545_v8 }
 0x534   :  { %3759 = vmatpush3.bf16.msra.mxu0 %v4074_v17  ;;  %3436 = vmatprep.mubr.msk.f32.mxu0 %vm3981_vm0, %v3982_v4 }
 0x535   :  { %3760 = vmatprep.subr.bf16.mxu0 %v3980_v2 }
 0x538   :  { %3762 = vmatpush3.bf16.msra.mxu0 %v4077_v18 }
 0x539   :  { %3772 = vmatprep.subr.bf16.mxu0 %v3980_v2 }
 0x606   :  { %v619_v11 = vpop.f32.mrb[4].mxu0 }
 0x607   :  { %v620_v12 = vadd.f32 %v619_v11, %v549_v10  ;;  %v3427_v13 = vpop.f32.mrb[5].mxu0 }
 0x609   :  { %3922 = vtanh.f32 %v620_v12 }
 0x613   :  { %v3923_v14 = vpop.eup %3922 }
 0x614   :  { %3437 = vmatmul.mubr.msk.f32.vlgmr.msra.gmra.mrb[6].mxu0 %vm158_vm2, %v3923_v14 }
 0x615   :  { %3774 = vmatpush3.bf16.msra.mxu0 %v4034_v3  ;;  %3461 = vmatprep.mubr.msk.f32.mxu0 %vm3981_vm0, %v3982_v4 }
 0x616   :  { %3775 = vmatprep.subr.bf16.mxu0 %v3980_v2 }
 0x6e7   :  { %v693_v15 = vpop.f32.mrb[6].mxu0 }
 0x6e8   :  { %v697_v16 = vadd.f32 %v693_v15, %v545_v8  ;;  %v3438_v19 = vpop.f32.mrb[7].mxu0 }
 0x6e9   :  { %v1467_v19 = vrot.slane %v4100_v30, %v4152_v50 }
 0x6ea   :  { %v698_v20 = vadd.f32 %v697_v16, %v4140_v45 }
 0x6ec   :  { %3444 = vmatmul.mubr.msk.f32.vlgmr.msra.gmra.mrb[8].mxu1 %vm73_vm1, %v698_v20 }
 0x6ed   :  { %3768 = vmatpush3.bf16.msra.mxu1 %v4074_v17  ;;  %3454 = vmatprep.mubr.msk.f32.mxu1 %vm3981_vm0, %v3982_v4 }
 0x6ee   :  { %3769 = vmatprep.subr.bf16.mxu1 %v3980_v2 }
 0x6f1   :  { %3771 = vmatpush3.bf16.msra.mxu1 %v4077_v18 }
 0x6f2   :  { %3781 = vmatprep.subr.bf16.mxu1 %v3980_v2 }
 0x7bf   :  { %v772_v25 = vpop.f32.mrb[8].mxu1 }
 0x7c0   :  { %v773_v35 = vadd.f32 %v772_v25, %v702_v24  ;;  %v3445_v38 = vpop.f32.mrb[9].mxu1 }
 0x7c2   :  { %3924 = vtanh.f32 %v773_v35 }
 0x7cc   :  { %v3925_v39 = vpop.eup %3924 }
 0x7cd   :  { %3455 = vmatmul.mubr.msk.f32.vlgmr.msra.gmra.mrb[10].mxu1 %vm158_vm2, %v3925_v39 }
 0x7ce   :  { %3783 = vmatpush3.bf16.msra.mxu1 %v4034_v3  ;;  %3479 = vmatprep.mubr.msk.f32.mxu1 %vm3981_vm0, %v3982_v4 }
 0x7cf   :  { %3784 = vmatprep.subr.bf16.mxu1 %v3980_v2 }
 0x8a0   :  { %v846_v40 = vpop.f32.mrb[10].mxu1 }
 0x8a1   :  { %v850_v41 = vadd.f32 %v846_v40, %v698_v20  ;;  %v3456_v42 = vpop.f32.mrb[11].mxu1 }
 0x8a2   :  { %v1620_v42 = vrot.slane %v4100_v30, %v4170_v60 }
 0x8a3   :  { %v851_v43 = vadd.f32 %v850_v41, %v4140_v45 }
 0x8a5   :  { %3462 = vmatmul.mubr.msk.f32.vlgmr.msra.gmra.mrb[8].mxu0 %vm73_vm1, %v851_v43 }
 0x8a6   :  { %3777 = vmatpush3.bf16.msra.mxu0 %v4074_v17  ;;  %3472 = vmatprep.mubr.msk.f32.mxu0 %vm3981_vm0, %v3982_v4 }
 0x8a7   :  { %3778 = vmatprep.subr.bf16.mxu0 %v3980_v2 }
 0x8aa   :  { %3780 = vmatpush3.bf16.msra.mxu0 %v4077_v18 }
 0x8ab   :  { %3790 = vmatprep.subr.bf16.mxu0 %v3980_v2 }
 0x978   :  { %v925_v44 = vpop.f32.mrb[8].mxu0 }
 0x979   :  { %v926_v46 = vadd.f32 %v925_v44, %v855_v26  ;;  %v3463_v47 = vpop.f32.mrb[9].mxu0 }
 0x97b   :  { %3926 = vtanh.f32 %v926_v46 }
 0x985   :  { %v3927_v48 = vpop.eup %3926 }
 0x986   :  { %3473 = vmatmul.mubr.msk.f32.vlgmr.msra.gmra.mrb[10].mxu0 %vm158_vm2, %v3927_v48 }
 0x987   :  { %3792 = vmatpush3.bf16.msra.mxu0 %v4034_v3  ;;  %3497 = vmatprep.mubr.msk.f32.mxu0 %vm3981_vm0, %v3982_v4 }
 0x988   :  { %3793 = vmatprep.subr.bf16.mxu0 %v3980_v2 }
 0xa59   :  { %v999_v49 = vpop.f32.mrb[10].mxu0 }
 0xa5a   :  { %v1003_v51 = vadd.f32 %v999_v49, %v851_v43  ;;  %v3474_v52 = vpop.f32.mrb[11].mxu0 }
 0xa5b   :  { %v1773_v52 = vrot.slane %v4100_v30, %v4188_v9 }
 0xa5c   :  { %v1004_v53 = vadd.f32 %v1003_v51, %v4140_v45 }
 0xa5e   :  { %3480 = vmatmul.mubr.msk.f32.vlgmr.msra.gmra.mrb[12].mxu1 %vm73_vm1, %v1004_v53 }
 0xa5f   :  { %3786 = vmatpush3.bf16.msra.mxu1 %v4074_v17  ;;  %3490 = vmatprep.mubr.msk.f32.mxu1 %vm3981_vm0, %v3982_v4 }
 0xa60   :  { %3787 = vmatprep.subr.bf16.mxu1 %v3980_v2 }
 0xa63   :  { %3789 = vmatpush3.bf16.msra.mxu1 %v4077_v18 }
 0xa64   :  { %3799 = vmatprep.subr.bf16.mxu1 %v3980_v2 }
 0xb31   :  { %v1078_v54 = vpop.f32.mrb[12].mxu1 }
 0xb32   :  { %v1079_v55 = vadd.f32 %v1078_v54, %v1008_v27  ;;  %v3481_v56 = vpop.f32.mrb[13].mxu1 }
 0xb34   :  { %3928 = vtanh.f32 %v1079_v55 }
 0xb3e   :  { %v3929_v57 = vpop.eup %3928 }
 0xb3f   :  { %3491 = vmatmul.mubr.msk.f32.vlgmr.msra.gmra.mrb[14].mxu1 %vm158_vm2, %v3929_v57 }
 0xb40   :  { %3801 = vmatpush3.bf16.msra.mxu1 %v4034_v3  ;;  %3515 = vmatprep.mubr.msk.f32.mxu1 %vm3981_vm0, %v3982_v4 }
 0xb41   :  { %3802 = vmatprep.subr.bf16.mxu1 %v3980_v2 }
 0xc12   :  { %v1152_v58 = vpop.f32.mrb[14].mxu1 }
 0xc13   :  { %v1156_v59 = vadd.f32 %v1152_v58, %v1004_v53  ;;  %v3492_v61 = vpop.f32.mrb[15].mxu1 }
 0xc15   :  { %v1157_v62 = vadd.f32 %v1156_v59, %v4140_v45 }
 0xc17   :  { %3498 = vmatmul.mubr.msk.f32.vlgmr.msra.gmra.mrb[12].mxu0 %vm73_vm1, %v1157_v62 }
 0xc18   :  { %3795 = vmatpush3.bf16.msra.mxu0 %v4074_v17  ;;  %3508 = vmatprep.mubr.msk.f32.mxu0 %vm3981_vm0, %v3982_v4 }
 0xc19   :  { %3796 = vmatprep.subr.bf16.mxu0 %v3980_v2 }
 0xc1c   :  { %3798 = vmatpush3.bf16.msra.mxu0 %v4077_v18 }
 0xc1d   :  { %3808 = vmatprep.subr.bf16.mxu0 %v3980_v2 }
 0xcea   :  { %v1231_v63 = vpop.f32.mrb[12].mxu0 }
 0xceb   :  { %v1232_v0 = vadd.f32 %v1231_v63, %v1161_v28  ;;  %v3499_v1 = vpop.f32.mrb[13].mxu0 }
 0xced   :  { %3930 = vtanh.f32 %v1232_v0 }
 0xcf7   :  { %v3931_v5 = vpop.eup %3930 }
 0xcf8   :  { %3509 = vmatmul.mubr.msk.f32.vlgmr.msra.gmra.mrb[14].mxu0 %vm158_vm2, %v3931_v5 }
 0xcf9   :  { %3810 = vmatpush3.bf16.msra.mxu0 %v4034_v3  ;;  %3533 = vmatprep.mubr.msk.f32.mxu0 %vm3981_vm0, %v3982_v4 }
 0xcfa   :  { %3811 = vmatprep.subr.bf16.mxu0 %v3980_v2 }
 0xdcb   :  { %v1305_v6 = vpop.f32.mrb[14].mxu0 }
 0xdcc   :  { %v1309_v7 = vadd.f32 %v1305_v6, %v1157_v62  ;;  %v3510_v8 = vpop.f32.mrb[15].mxu0 }
 0xdce   :  { %v1310_v22 = vadd.f32 %v1309_v7, %v4140_v45 }
 0xdd0   :  { %3516 = vmatmul.mubr.msk.f32.vlgmr.msra.gmra.mrb[16].mxu1 %vm73_vm1, %v1310_v22 }
 0xdd1   :  { %3804 = vmatpush3.bf16.msra.mxu1 %v4074_v17  ;;  %3526 = vmatprep.mubr.msk.f32.mxu1 %vm3981_vm0, %v3982_v4 }
 0xdd2   :  { %3805 = vmatprep.subr.bf16.mxu1 %v3980_v2 }
 0xdd5   :  { %3807 = vmatpush3.bf16.msra.mxu1 %v4077_v18 }
 0xdd6   :  { %3817 = vmatprep.subr.bf16.mxu1 %v3980_v2 }
 0xea3   :  { %v1384_v36 = vpop.f32.mrb[16].mxu1 }
 0xea4   :  { %v1385_v10 = vadd.f32 %v1384_v36, %v1314_v29  ;;  %v3517_v11 = vpop.f32.mrb[17].mxu1 }
 0xea6   :  { %3932 = vtanh.f32 %v1385_v10 }
 0xeb0   :  { %v3933_v12 = vpop.eup %3932 }
 0xeb1   :  { %3527 = vmatmul.mubr.msk.f32.vlgmr.msra.gmra.mrb[18].mxu1 %vm158_vm2, %v3933_v12 }
 0xeb2   :  { %3819 = vmatpush3.bf16.msra.mxu1 %v4034_v3  ;;  %3551 = vmatprep.mubr.msk.f32.mxu1 %vm3981_vm0, %v3982_v4 }
 0xeb3   :  { %3820 = vmatprep.subr.bf16.mxu1 %v3980_v2 }
 0xf84   :  { %v1458_v13 = vpop.f32.mrb[18].mxu1 }
 0xf85   :  { %v1462_v14 = vadd.f32 %v1458_v13, %v1310_v22  ;;  %v3528_v15 = vpop.f32.mrb[19].mxu1 }
 0xf87   :  { %v1463_v16 = vadd.f32 %v1462_v14, %v4140_v45 }
 0xf89   :  { %3534 = vmatmul.mubr.msk.f32.vlgmr.msra.gmra.mrb[16].mxu0 %vm73_vm1, %v1463_v16 }
 0xf8a   :  { %3813 = vmatpush3.bf16.msra.mxu0 %v4074_v17  ;;  %3544 = vmatprep.mubr.msk.f32.mxu0 %vm3981_vm0, %v3982_v4 }
 0xf8b   :  { %3814 = vmatprep.subr.bf16.mxu0 %v3980_v2 }
 0xf8e   :  { %3816 = vmatpush3.bf16.msra.mxu0 %v4077_v18 }
 0xf8f   :  { %3826 = vmatprep.subr.bf16.mxu0 %v3980_v2 }
0x105c   :  { %v1537_v20 = vpop.f32.mrb[16].mxu0 }
0x105d   :  { %v1538_v24 = vadd.f32 %v1537_v20, %v1467_v19  ;;  %v3535_v25 = vpop.f32.mrb[17].mxu0 }
0x105f   :  { %3934 = vtanh.f32 %v1538_v24 }
0x1069   :  { %v3935_v35 = vpop.eup %3934 }
0x106a   :  { %3545 = vmatmul.mubr.msk.f32.vlgmr.msra.gmra.mrb[18].mxu0 %vm158_vm2, %v3935_v35  ;;  %v38_v35 = vld [vmem:[%s4442_s0 + $0x10] sm:$0xff]  ;;  %s3984_s0 = smov [#allocation2]  }
0x106b   :  { %3828 = vmatpush3.bf16.msra.mxu0 %v4034_v3  ;;  %3569 = vmatprep.mubr.msk.f32.mxu0 %vm3981_vm0, %v3982_v4  ;;  %s3154_s21 = sshll.u32 %s3984_s0, 4  ;;  %s3155_s21 = int_to_ptr.vmem [resolvable:$true] %s3154_s21 }
0x106c   :  { %3829 = vmatprep.subr.bf16.mxu0 %v3980_v2  ;;  %51 = vperm.xlu1 %3915, %v38_v35   ;;  %s3956_s22 = scalar_lea.vmem %s3155_s21, 256  ;;  %p3961_p1 = scmp.lt.s32.totalorder %s3155_s21, %s3155_s21 }
0x106d   :  { %p3957_p0 = scmp.ne.s32.totalorder %s3155_s21, %s3956_s22  ;;  %p3962_p2 = scmp.lt.s32.totalorder %s3956_s22, %s3956_s22 }
0x106f   :  { %p3963_p3 = por %p3962_p2, %p3961_p1 }
0x1071   :  { %p3964_p4 = pnand %p3963_p3, %p3957_p0 }
0x113d   :  { %v1611_v38 = vpop.f32.mrb[18].mxu0 }
0x113e   :  { %v1615_v39 = vadd.f32 %v1611_v38, %v1463_v16  ;;  %v3546_v40 = vpop.f32.mrb[19].mxu0 }
0x1140   :  { %v1616_v41 = vadd.f32 %v1615_v39, %v4140_v45 }
0x1142   :  { %3552 = vmatmul.mubr.msk.f32.vlgmr.msra.gmra.mrb[20].mxu1 %vm73_vm1, %v1616_v41 }
0x1143   :  { %3822 = vmatpush3.bf16.msra.mxu1 %v4074_v17  ;;  %3562 = vmatprep.mubr.msk.f32.mxu1 %vm3981_vm0, %v3982_v4 }
0x1144   :  { %3823 = vmatprep.subr.bf16.mxu1 %v3980_v2 }
0x1147   :  { %3825 = vmatpush3.bf16.msra.mxu1 %v4077_v18 }
0x1148   :  { %3835 = vmatprep.subr.bf16.mxu1 %v3980_v2 }
0x1215   :  { %v1690_v43 = vpop.f32.mrb[20].mxu1 }
0x1216   :  { %v1691_v26 = vadd.f32 %v1690_v43, %v1620_v42  ;;  %v3553_v44 = vpop.f32.mrb[21].mxu1 }
0x1218   :  { %3936 = vtanh.f32 %v1691_v26 }
0x1222   :  { %v3937_v46 = vpop.eup %3936 }
0x1223   :  { %3563 = vmatmul.mubr.msk.f32.vlgmr.msra.gmra.mrb[22].mxu1 %vm158_vm2, %v3937_v46 }
0x1224   :  { %3837 = vmatpush3.bf16.msra.mxu1 %v4034_v3  ;;  %3587 = vmatprep.mubr.msk.f32.mxu1 %vm3981_vm0, %v3982_v4 }
0x1225   :  { %3838 = vmatprep.subr.bf16.mxu1 %v3980_v2 }
0x12f6   :  { %v1764_v47 = vpop.f32.mrb[22].mxu1 }
0x12f7   :  { %v1768_v48 = vadd.f32 %v1764_v47, %v1616_v41  ;;  %v3564_v49 = vpop.f32.mrb[23].mxu1  ;;  %v52_v41 = vpop.permute.xlu1 %51 }
0x12f8   :  { %v62_v42 = vmul.f32 %v4085_v21, %v52_v41 }
0x12f9   :  { %v1769_v51 = vadd.f32 %v1768_v48, %v4140_v45 }
0x12fa   :  { %v71_v43 = vadd.f32 %v4092_v23, %v62_v42 }
0x12fb   :  { %3570 = vmatmul.mubr.msk.f32.vlgmr.msra.gmra.mrb[20].mxu0 %vm73_vm1, %v1769_v51 }
0x12fc   :  { %3831 = vmatpush3.bf16.msra.mxu0 %v4074_v17  ;;  %3580 = vmatprep.mubr.msk.f32.mxu0 %vm3981_vm0, %v3982_v4  ;;  %v2538_v26 = vrot.slane %v71_v43, %v4127_v37  ;;  %v2691_v37 = vrot.slane %v71_v43, %v4152_v50 }
0x12fd   :  { %3832 = vmatprep.subr.bf16.mxu0 %v3980_v2 }
0x1300   :  { %3834 = vmatpush3.bf16.msra.mxu0 %v4077_v18 }
0x1301   :  { %3844 = vmatprep.subr.bf16.mxu0 %v3980_v2 }
0x13ce   :  { %v1843_v53 = vpop.f32.mrb[20].mxu0 }
0x13cf   :  { %v1844_v27 = vadd.f32 %v1843_v53, %v1773_v52  ;;  %v3571_v54 = vpop.f32.mrb[21].mxu0 }
0x13d1   :  { %3938 = vtanh.f32 %v1844_v27 }
0x13db   :  { %v3939_v55 = vpop.eup %3938 }
0x13dc   :  { %3581 = vmatmul.mubr.msk.f32.vlgmr.msra.gmra.mrb[22].mxu0 %vm158_vm2, %v3939_v55 }
0x13dd   :  { %3846 = vmatpush3.bf16.msra.mxu0 %v4034_v3  ;;  %3605 = vmatprep.mubr.msk.f32.mxu0 %vm3981_vm0, %v3982_v4 }
0x13de   :  { %3847 = vmatprep.subr.bf16.mxu0 %v3980_v2 }
0x14af   :  { %v1917_v56 = vpop.f32.mrb[22].mxu0 }
0x14b0   :  { %v1921_v57 = vadd.f32 %v1917_v56, %v1769_v51  ;;  %v3582_v58 = vpop.f32.mrb[23].mxu0 }
0x14b2   :  { %v1922_v59 = vadd.f32 %v1921_v57, %v4140_v45 }
0x14b4   :  { %3588 = vmatmul.mubr.msk.f32.vlgmr.msra.gmra.mrb[24].mxu1 %vm73_vm1, %v1922_v59 }
0x14b5   :  { %3840 = vmatpush3.bf16.msra.mxu1 %v4074_v17  ;;  %3598 = vmatprep.mubr.msk.f32.mxu1 %vm3981_vm0, %v3982_v4 }
0x14b6   :  { %3841 = vmatprep.subr.bf16.mxu1 %v3980_v2 }
0x14b9   :  { %3843 = vmatpush3.bf16.msra.mxu1 %v4077_v18 }
0x14ba   :  { %3853 = vmatprep.subr.bf16.mxu1 %v3980_v2 }
0x1587   :  { %v1996_v30 = vpop.f32.mrb[24].mxu1 }
0x1588   :  { %v1997_v61 = vadd.f32 %v1996_v30, %v4105_v31  ;;  %v3589_v62 = vpop.f32.mrb[25].mxu1 }
0x158a   :  { %3940 = vtanh.f32 %v1997_v61 }
0x1594   :  { %v3941_v28 = vpop.eup %3940 }
0x1595   :  { %3599 = vmatmul.mubr.msk.f32.vlgmr.msra.gmra.mrb[26].mxu1 %vm158_vm2, %v3941_v28 }
0x1596   :  { %3855 = vmatpush3.bf16.msra.mxu1 %v4034_v3  ;;  %3623 = vmatprep.mubr.msk.f32.mxu1 %vm3981_vm0, %v3982_v4 }
0x1597   :  { %3856 = vmatprep.subr.bf16.mxu1 %v3980_v2 }
0x1668   :  { %v2070_v63 = vpop.f32.mrb[26].mxu1 }
0x1669   :  { %v2074_v0 = vadd.f32 %v2070_v63, %v1922_v59  ;;  %v3600_v1 = vpop.f32.mrb[27].mxu1 }
0x166b   :  { %v2075_v5 = vadd.f32 %v2074_v0, %v4140_v45 }
0x166d   :  { %3606 = vmatmul.mubr.msk.f32.vlgmr.msra.gmra.mrb[24].mxu0 %vm73_vm1, %v2075_v5 }
0x166e   :  { %3849 = vmatpush3.bf16.msra.mxu0 %v4074_v17  ;;  %3616 = vmatprep.mubr.msk.f32.mxu0 %vm3981_vm0, %v3982_v4 }
0x166f   :  { %3850 = vmatprep.subr.bf16.mxu0 %v3980_v2 }
0x1672   :  { %3852 = vmatpush3.bf16.msra.mxu0 %v4077_v18 }
0x1673   :  { %3862 = vmatprep.subr.bf16.mxu0 %v3980_v2 }
0x1740   :  { %v2149_v31 = vpop.f32.mrb[24].mxu0 }
0x1741   :  { %v2150_v6 = vadd.f32 %v2149_v31, %v4110_v32  ;;  %v3607_v7 = vpop.f32.mrb[25].mxu0 }
0x1743   :  { %3942 = vtanh.f32 %v2150_v6 }
0x174d   :  { %v3943_v8 = vpop.eup %3942 }
0x174e   :  { %3617 = vmatmul.mubr.msk.f32.vlgmr.msra.gmra.mrb[26].mxu0 %vm158_vm2, %v3943_v8 }
0x174f   :  { %3864 = vmatpush3.bf16.msra.mxu0 %v4034_v3  ;;  %3641 = vmatprep.mubr.msk.f32.mxu0 %vm3981_vm0, %v3982_v4 }
0x1750   :  { %3865 = vmatprep.subr.bf16.mxu0 %v3980_v2 }
0x1821   :  { %v2223_v22 = vpop.f32.mrb[26].mxu0 }
0x1822   :  { %v2227_v29 = vadd.f32 %v2223_v22, %v2075_v5  ;;  %v3618_v36 = vpop.f32.mrb[27].mxu0 }
0x1824   :  { %v2228_v10 = vadd.f32 %v2227_v29, %v4140_v45 }
0x1826   :  { %3624 = vmatmul.mubr.msk.f32.vlgmr.msra.gmra.mrb[28].mxu1 %vm73_vm1, %v2228_v10 }
0x1827   :  { %3858 = vmatpush3.bf16.msra.mxu1 %v4074_v17  ;;  %3634 = vmatprep.mubr.msk.f32.mxu1 %vm3981_vm0, %v3982_v4 }
0x1828   :  { %3859 = vmatprep.subr.bf16.mxu1 %v3980_v2 }
0x182b   :  { %3861 = vmatpush3.bf16.msra.mxu1 %v4077_v18 }
0x182c   :  { %3871 = vmatprep.subr.bf16.mxu1 %v3980_v2 }
0x18f9   :  { %v2302_v32 = vpop.f32.mrb[28].mxu1 }
0x18fa   :  { %v2303_v11 = vadd.f32 %v2302_v32, %v4115_v33  ;;  %v3625_v12 = vpop.f32.mrb[29].mxu1 }
0x18fc   :  { %3944 = vtanh.f32 %v2303_v11 }
0x1906   :  { %v3945_v13 = vpop.eup %3944 }
0x1907   :  { %3635 = vmatmul.mubr.msk.f32.vlgmr.msra.gmra.mrb[30].mxu1 %vm158_vm2, %v3945_v13 }
0x1908   :  { %3873 = vmatpush3.bf16.msra.mxu1 %v4034_v3  ;;  %3659 = vmatprep.mubr.msk.f32.mxu1 %vm3981_vm0, %v3982_v4 }
0x1909   :  { %3874 = vmatprep.subr.bf16.mxu1 %v3980_v2 }
0x19da   :  { %v2376_v14 = vpop.f32.mrb[30].mxu1 }
0x19db   :  { %v2380_v15 = vadd.f32 %v2376_v14, %v2228_v10  ;;  %v3636_v16 = vpop.f32.mrb[31].mxu1 }
0x19dd   :  { %v2381_v19 = vadd.f32 %v2380_v15, %v4140_v45 }
0x19df   :  { %3642 = vmatmul.mubr.msk.f32.vlgmr.msra.gmra.mrb[28].mxu0 %vm73_vm1, %v2381_v19 }
0x19e0   :  { %3867 = vmatpush3.bf16.msra.mxu0 %v4074_v17  ;;  %3652 = vmatprep.mubr.msk.f32.mxu0 %vm3981_vm0, %v3982_v4 }
0x19e1   :  { %3868 = vmatprep.subr.bf16.mxu0 %v3980_v2 }
0x19e4   :  { %3870 = vmatpush3.bf16.msra.mxu0 %v4077_v18 }
0x19e5   :  { %3880 = vmatprep.subr.bf16.mxu0 %v3980_v2 }
0x1ab2   :  { %v2455_v33 = vpop.f32.mrb[28].mxu0 }
0x1ab3   :  { %v2456_v20 = vadd.f32 %v2455_v33, %v4120_v34  ;;  %v3643_v24 = vpop.f32.mrb[29].mxu0 }
0x1ab5   :  { %3946 = vtanh.f32 %v2456_v20 }
0x1abf   :  { %v3947_v25 = vpop.eup %3946 }
0x1ac0   :  { %3653 = vmatmul.mubr.msk.f32.vlgmr.msra.gmra.mrb[30].mxu0 %vm158_vm2, %v3947_v25 }
0x1ac1   :  { %3882 = vmatpush3.bf16.msra.mxu0 %v4034_v3  ;;  %3677 = vmatprep.mubr.msk.f32.mxu0 %vm3981_vm0, %v3982_v4 }
0x1ac2   :  { %3883 = vmatprep.subr.bf16.mxu0 %v3980_v2 }
0x1b93   :  { %v2529_v38 = vpop.f32.mrb[30].mxu0 }
0x1b94   :  { %v2533_v39 = vadd.f32 %v2529_v38, %v2381_v19  ;;  %v3654_v34 = vpop.f32.mrb[31].mxu0 }
0x1b96   :  { %v2534_v40 = vadd.f32 %v2533_v39, %v4140_v45 }
0x1b98   :  { %3660 = vmatmul.mubr.msk.f32.vlgmr.msra.gmra.mrb[32].mxu1 %vm73_vm1, %v2534_v40 }
0x1b99   :  { %3876 = vmatpush3.bf16.msra.mxu1 %v4074_v17  ;;  %3670 = vmatprep.mubr.msk.f32.mxu1 %vm3981_vm0, %v3982_v4 }
0x1b9a   :  { %3877 = vmatprep.subr.bf16.mxu1 %v3980_v2 }
0x1b9d   :  { %3879 = vmatpush3.bf16.msra.mxu1 %v4077_v18 }
0x1b9e   :  { %3889 = vmatprep.subr.bf16.mxu1 %v3980_v2 }
0x1c6b   :  { %v2608_v44 = vpop.f32.mrb[32].mxu1 }
0x1c6c   :  { %v2609_v46 = vadd.f32 %v2608_v44, %v2538_v26  ;;  %v3661_v47 = vpop.f32.mrb[33].mxu1 }
0x1c6e   :  { %3948 = vtanh.f32 %v2609_v46 }
0x1c78   :  { %v3949_v48 = vpop.eup %3948 }
0x1c79   :  { %3671 = vmatmul.mubr.msk.f32.vlgmr.msra.gmra.mrb[34].mxu1 %vm158_vm2, %v3949_v48 }
0x1c7a   :  { %3891 = vmatpush3.bf16.msra.mxu1 %v4034_v3  ;;  %3695 = vmatprep.mubr.msk.f32.mxu1 %vm3981_vm0, %v3982_v4 }
0x1c7b   :  { %3892 = vmatprep.subr.bf16.mxu1 %v3980_v2 }
0x1d4c   :  { %v2682_v49 = vpop.f32.mrb[34].mxu1 }
0x1d4d   :  { %v2686_v21 = vadd.f32 %v2682_v49, %v2534_v40  ;;  %v3672_v51 = vpop.f32.mrb[35].mxu1 }
0x1d4f   :  { %v2687_v23 = vadd.f32 %v2686_v21, %v4140_v45 }
0x1d51   :  { %3678 = vmatmul.mubr.msk.f32.vlgmr.msra.gmra.mrb[32].mxu0 %vm73_vm1, %v2687_v23 }
0x1d52   :  { %3885 = vmatpush3.bf16.msra.mxu0 %v4074_v17  ;;  %3688 = vmatprep.mubr.msk.f32.mxu0 %vm3981_vm0, %v3982_v4 }
0x1d53   :  { %3886 = vmatprep.subr.bf16.mxu0 %v3980_v2 }
0x1d56   :  { %3888 = vmatpush3.bf16.msra.mxu0 %v4077_v18 }
0x1d57   :  { %3898 = vmatprep.subr.bf16.mxu0 %v3980_v2 }
0x1e24   :  { %v2761_v52 = vpop.f32.mrb[32].mxu0 }
0x1e25   :  { %v2762_v53 = vadd.f32 %v2761_v52, %v2691_v37  ;;  %v3679_v27 = vpop.f32.mrb[33].mxu0 }
0x1e27   :  { %3950 = vtanh.f32 %v2762_v53 }
0x1e31   :  { %v3951_v54 = vpop.eup %3950 }
0x1e32   :  { %3689 = vmatmul.mubr.msk.f32.vlgmr.msra.gmra.mrb[34].mxu0 %vm158_vm2, %v3951_v54 }
0x1e33   :  { %3900 = vmatpush3.bf16.msra.mxu0 %v4034_v3  ;;  %3713 = vmatprep.mubr.msk.f32.mxu0 %vm3981_vm0, %v3982_v4  ;;  %v2844_v3 = vrot.slane %v71_v43, %v4170_v60  ;;  %v2997_v60 = vrot.slane %v71_v43, %v4188_v9 }
0x1e34   :  { %3901 = vmatprep.subr.bf16.mxu0 %v3980_v2 }
0x1f05   :  { %v2835_v55 = vpop.f32.mrb[34].mxu0 }
0x1f06   :  { %v2839_v56 = vadd.f32 %v2835_v55, %v2687_v23  ;;  %v3690_v57 = vpop.f32.mrb[35].mxu0 }
0x1f08   :  { %v2840_v58 = vadd.f32 %v2839_v56, %v4140_v45 }
0x1f0a   :  { %3696 = vmatmul.mubr.msk.f32.vlgmr.msra.gmra.mrb[36].mxu1 %vm73_vm1, %v2840_v58 }
0x1f0b   :  { %3894 = vmatpush3.bf16.msra.mxu1 %v4074_v17  ;;  %3706 = vmatprep.mubr.msk.f32.mxu1 %vm3981_vm0, %v3982_v4 }
0x1f0c   :  { %3895 = vmatprep.subr.bf16.mxu1 %v3980_v2 }
0x1f0f   :  { %3897 = vmatpush3.bf16.msra.mxu1 %v4077_v18 }
0x1fdd   :  { %v2914_v50 = vpop.f32.mrb[36].mxu1 }
0x1fde   :  { %v2915_v59 = vadd.f32 %v2914_v50, %v2844_v3  ;;  %v3697_v30 = vpop.f32.mrb[37].mxu1 }
0x1fe0   :  { %3952 = vtanh.f32 %v2915_v59 }
0x1fea   :  { %v3953_v61 = vpop.eup %3952 }
0x1feb   :  { %3707 = vmatmul.mubr.msk.f32.vlgmr.msra.gmra.mrb[38].mxu1 %vm158_vm2, %v3953_v61 }
0x20be   :  { %v2988_v62 = vpop.f32.mrb[38].mxu1 }
0x20bf   :  { %v2992_v28 = vadd.f32 %v2988_v62, %v2840_v58  ;;  %v3708_v63 = vpop.f32.mrb[39].mxu1 }
0x20c1   :  { %v2993_v0 = vadd.f32 %v2992_v28, %v4140_v45 }
0x20c3   :  { %3714 = vmatmul.mubr.msk.f32.vlgmr.msra.gmra.mrb[36].mxu0 %vm73_vm1, %v2993_v0 }
0x20c4   :  { %3903 = vmatpush3.bf16.msra.mxu0 %v4074_v17  ;;  %3724 = vmatprep.mubr.msk.f32.mxu0 %vm3981_vm0, %v3982_v4 }
0x20c5   :  { %3904 = vmatprep.subr.bf16.mxu0 %v3980_v2 }
0x20c8   :  { %3906 = vmatpush3.bf16.msra.mxu0 %v4077_v18 }
0x2196   :  { %v3067_v1 = vpop.f32.mrb[36].mxu0 }
0x2197   :  { %v3068_v5 = vadd.f32 %v3067_v1, %v2997_v60  ;;  %v3715_v31 = vpop.f32.mrb[37].mxu0 }
0x2199   :  { %3954 = vtanh.f32 %v3068_v5 }
0x21a3   :  { %v3955_v6 = vpop.eup %3954 }
0x21a4   :  { %3725 = vmatmul.mubr.msk.f32.vlgmr.msra.gmra.mrb[38].mxu0 %vm158_vm2, %v3955_v6 }
0x2277   :  { %v3141_v7 = vpop.f32.mrb[38].mxu0 }
0x2278   :  { %v3145_v17 = vadd.f32 %v3141_v7, %v2993_v0  ;;  %v3726_v8 = vpop.f32.mrb[39].mxu0 }
0x227a   :  { %v3146_v4 = vadd.f32 %v3145_v17, %v4140_v45 }
0x227c   :  { %3148 = vst.msk [vmem:[#allocation2 + $0x8] sm:$0xff] %vm73_vm1, %v3146_v4 }
0x227d   :  { %3967 = shalt.err (!%p3964_p4)
}
0x227e   :  { %s3968_s25 = scalar_lea.hbm %s4449_s7, 256 }
0x227f   :  { %p3969_p5 = scmp.ne.s32.totalorder %s4449_s7, %s3968_s25  ;;  %p3972_p6 = scmp.lt.u32.totalorder %s3968_s25, %s4449_s7 }
0x2281   :  { %p3974_p7 = pnand %p3972_p6, %p3969_p5 }
0x2283   :  { %3977 = shalt.err (!%p3974_p7)
}
0x2284   :  { %s3985_s30 = smov 128   ;;  %s3986_s8 = smov 8  }
0x2285   :  { %3160 = dma.vmem_to_hbm [thread:$0]  %s3155_s21, 256, %s4449_s7, [#allocation3], %s3985_s30, %s3985_s30, %s3986_s8  }
0x2286   :  { %3978 = dma.done.wait [#allocation3], 256  }
0x2287   :  { %3979 = vsyncadd [#allocation3], 4294967040 }
0x2288   :  { %3164 = vsyncpa [#allocation3], 1 }

</bundles_post_ra>
